<compile_context>
chip_gen: v5e
topology: v5e:2x2
jax: 0.10.0
libtpu: 0.0.40
codegen_flags: <defaults>
</compile_context>

<pallas_src>
import math

import jax
import jax.numpy as jnp
from jax.experimental import pallas as pl
from jax.experimental.pallas import tpu as pltpu


def mha_kernel(x_ref, val_ref, wq_ref, bq_ref, wv_ref, bv_ref,
               wc_ref, bc_ref, o_ref, acc_ref):
    """One (seq-tile i, F*H-tile j) grid step.

    j walks the F*H axis: the N axis of the q/v projections and the K
    (reduction) axis of the concat matmul, accumulated into acc_ref.
    """
    j = pl.program_id(1)

    @pl.when(j == 0)
    def _():
        acc_ref[...] = jnp.zeros_like(acc_ref)

    x = x_ref[...]        # (TS, F)  bf16
    v_in = val_ref[...]   # (TS, F)  bf16

    # q_j = x @ Wq[:, j-slice] + bq[j-slice]   (MXU, f32 acc; bias add in f32)
    q = jnp.dot(x, wq_ref[...], preferred_element_type=jnp.float32) + bq_ref[...]
    # v_j = value @ Wv[:, j-slice] + bv[j-slice]
    v = jnp.dot(v_in, wv_ref[...], preferred_element_type=jnp.float32) + bv_ref[...]

    # Elementwise multiply in f32 (v5e has no bf16 VPU); cast the product to
    # bf16 only to feed the MXU for the concat matmul.
    qv = (q * v).astype(jnp.bfloat16)

    # Partial concat matmul over this F*H slice, accumulated in f32.
    acc_ref[...] += jnp.dot(qv, wc_ref[...], preferred_element_type=jnp.float32)

    @pl.when(j == pl.num_programs(1) - 1)
    def _():
        o_ref[...] = acc_ref[...] + bc_ref[...]


def multi_head_attention(x, value, params, *, tile_s=256, tile_fh=256):
    """x, value: (S, F) float32.  Returns (S, F) float32."""
    S, F = x.shape
    FH = params["wq_t"].shape[1]

    # ---- tile selection --------------------------------------------------
    # Sequence tile: as large as possible (feeds the MXU M dim); multiple of 8
    # (or the full sequence when it is small).  Tail blocks get padded, which
    # is harmless for this row-wise computation (padded rows are discarded).
    if S <= tile_s:
        tile_s = S
    else:
        tile_s = max(8, (tile_s // 8) * 8)
    # F*H tile: must evenly divide FH (a padded reduction block would pollute
    # the accumulator); fall back to a single reduction step otherwise.
    if FH <= tile_fh or FH % tile_fh != 0:
        tile_fh = FH

    grid = (pl.cdiv(S, tile_s), FH // tile_fh)

    # ---- dtypes ----------------------------------------------------------
    # bf16 matmul operands (2-4x MXU throughput, half the DMA bytes); f32
    # accumulation, f32 biases, f32 elementwise mul.
    x_bf = x.astype(jnp.bfloat16)
    val_bf = value.astype(jnp.bfloat16)
    wq = params["wq_t"].astype(jnp.bfloat16)
    wv = params["wv_t"].astype(jnp.bfloat16)
    wc = params["wc_t"].astype(jnp.bfloat16)
    bq = params["bq"].astype(jnp.float32)
    bv = params["bv"].astype(jnp.float32)
    bc = params["bc"].astype(jnp.float32)

    row_spec = pl.BlockSpec((tile_s, F), lambda i, j: (i, 0))

    cost = pl.CostEstimate(
        flops=int(6 * S * F * FH + S * FH),
        transcendentals=0,
        bytes_accessed=int(2 * S * F * 2                 # x, value (bf16)
                           + (2 * F * FH + FH * F) * 2   # Wq, Wv, Wc (bf16)
                           + (2 * FH + F) * 4            # biases (f32)
                           + S * F * 4))                 # output (f32)

    return pl.pallas_call(
        mha_kernel,
        out_shape=jax.ShapeDtypeStruct((S, F), jnp.float32),
        grid_spec=pltpu.PrefetchScalarGridSpec(
            num_scalar_prefetch=0,
            grid=grid,
            in_specs=[
                row_spec,                                          # x
                row_spec,                                          # value
                pl.BlockSpec((F, tile_fh), lambda i, j: (0, j)),   # Wq^T slice
                pl.BlockSpec((1, tile_fh), lambda i, j: (0, j)),   # bq slice
                pl.BlockSpec((F, tile_fh), lambda i, j: (0, j)),   # Wv^T slice
                pl.BlockSpec((1, tile_fh), lambda i, j: (0, j)),   # bv slice
                pl.BlockSpec((tile_fh, F), lambda i, j: (j, 0)),   # Wc^T slice
                pl.BlockSpec((1, F), lambda i, j: (0, 0)),         # bc
            ],
            out_specs=row_spec,
            scratch_shapes=[pltpu.VMEM((tile_s, F), jnp.float32)],
        ),
        compiler_params=pltpu.CompilerParams(
            dimension_semantics=("parallel", "arbitrary")),
        cost_estimate=cost,
    )(x_bf, val_bf, wq, bq, wv, bv, wc, bc)


def init_params(key, in_features, num_heads):
    """Deterministic params mirroring the nn.Linear shapes of the module."""
    F, H = in_features, num_heads
    ks = jax.random.split(key, 8)

    def linear(kw, kb, fan_in, fan_out):
        bound = 1.0 / math.sqrt(fan_in)
        w = jax.random.uniform(kw, (fan_out, fan_in), jnp.float32, -bound, bound)
        b = jax.random.uniform(kb, (fan_out,), jnp.float32, -bound, bound)
        return w, b

    wq, bq = linear(ks[0], ks[1], F, F * H)   # self.query
    wk, bk = linear(ks[2], ks[3], F, F * H)   # self.key (dead code in forward)
    wv, bv = linear(ks[4], ks[5], F, F * H)   # self.value
    wc, bc = linear(ks[6], ks[7], F * H, F)   # self.concat

    # Pre-transpose weights to (in, out); biases as (1, out) rows.
    return {
        "wq_t": wq.T, "bq": bq[None, :],
        "wk_t": wk.T, "bk": bk[None, :],   # kept for shape parity; unused
        "wv_t": wv.T, "bv": bv[None, :],
        "wc_t": wc.T, "bc": bc[None, :],
    }


def reference(x, value, p):
    q = x @ p["wq_t"] + p["bq"]
    v = value @ p["wv_t"] + p["bv"]
    return (q * v) @ p["wc_t"] + p["bc"]


def _check(x, value, params):
    out = jax.block_until_ready(multi_head_attention(x, value, params))
    ref = reference(x, value, params)
    assert out.shape == ref.shape
    # bf16 matmul operands (f32 accumulation) vs. pure-f32 reference -> loose
    # relative tolerance.
    err = float(jnp.max(jnp.abs(out - ref)))
    scale = float(jnp.maximum(jnp.max(jnp.abs(ref)), 1.0))
    assert err / scale < 5e-2, (err, scale)
    return out


if __name__ == "__main__":
    key = jax.random.PRNGKey(0)

    # 1) Shapes implied by the module's typical small config.
    in_features, num_heads, seq = 32, 2, 8
    kx, kv, kp = jax.random.split(key, 3)
    x = jax.random.normal(kx, (seq, in_features), jnp.float32)
    value = jax.random.normal(kv, (seq, in_features), jnp.float32)
    params = init_params(kp, in_features, num_heads)
    _check(x, value, params)

    # 2) A larger, lane-dense shape that exercises the multi-step grid
    #    (2 seq tiles x 2 reduction steps over F*H).
    in_features2, num_heads2, seq2 = 128, 4, 512
    kx2, kv2, kp2 = jax.random.split(jax.random.PRNGKey(1), 3)
    x2 = jax.random.normal(kx2, (seq2, in_features2), jnp.float32)
    value2 = jax.random.normal(kv2, (seq2, in_features2), jnp.float32)
    params2 = init_params(kp2, in_features2, num_heads2)
    _check(x2, value2, params2)

    print("KERNEL_OK")
</pallas_src>

<mosaic_0001>
module attributes {stable_mosaic.version = 11 : i64} {
  func.func @mha_kernel(%arg0: i32, %arg1: i32, %arg2: memref<8x32xbf16, #tpu.memory_space<vmem>>, %arg3: memref<8x32xbf16, #tpu.memory_space<vmem>>, %arg4: memref<32x64xbf16, #tpu.memory_space<vmem>>, %arg5: memref<1x64xf32, #tpu.memory_space<vmem>>, %arg6: memref<32x64xbf16, #tpu.memory_space<vmem>>, %arg7: memref<1x64xf32, #tpu.memory_space<vmem>>, %arg8: memref<64x32xbf16, #tpu.memory_space<vmem>>, %arg9: memref<1x32xf32, #tpu.memory_space<vmem>>, %arg10: memref<8x32xf32, #tpu.memory_space<vmem>>, %arg11: memref<8x32xf32, #tpu.memory_space<vmem>>) attributes {dimension_semantics = [#tpu.dimension_semantics<parallel>, #tpu.dimension_semantics<arbitrary>], iteration_bounds = array<i64: 1, 1>, scalar_prefetch = 0 : i64, scratch_operands = 1 : i64, tpu.core_type = #tpu.core_type<tc>, window_params = [{transform_indices = @transform_0, window_bounds = array<i64: 8, 32>}, {transform_indices = @transform_1, window_bounds = array<i64: 8, 32>}, {transform_indices = @transform_2, window_bounds = array<i64: 32, 64>}, {transform_indices = @transform_3, window_bounds = array<i64: 1, 64>}, {transform_indices = @transform_4, window_bounds = array<i64: 32, 64>}, {transform_indices = @transform_5, window_bounds = array<i64: 1, 64>}, {transform_indices = @transform_6, window_bounds = array<i64: 64, 32>}, {pipeline_mode = #tpu.pipeline_mode<synchronous>, transform_indices = @transform_7, window_bounds = array<i64: 1, 32>}, {transform_indices = @transform_8, window_bounds = array<i64: 8, 32>}]} {
    %c0_i32 = arith.constant 0 : i32
    %0 = arith.cmpi eq, %arg1, %c0_i32 : i32
    %1 = arith.extui %0 : i1 to i32
    %c0_i32_0 = arith.constant 0 : i32
    %2 = arith.cmpi ne, %1, %c0_i32_0 : i32
    scf.if %2 {
      %cst_22 = arith.constant 0.000000e+00 : f32
      %25 = vector.broadcast %cst_22 : f32 to vector<8x32xf32>
      %c0_23 = arith.constant 0 : index
      %c0_24 = arith.constant 0 : index
      %26 = vector.load %arg11[%c0_23, %c0_24] : memref<8x32xf32, #tpu.memory_space<vmem>>, vector<8x32xf32>
      tpu.vector_store %arg11[%c0_23, %c0_24], %25 {strides = array<i32>} : memref<8x32xf32, #tpu.memory_space<vmem>>, vector<8x32xf32>,
    } else {
    }
    %c0 = arith.constant 0 : index
    %c0_1 = arith.constant 0 : index
    %3 = vector.load %arg2[%c0, %c0_1] : memref<8x32xbf16, #tpu.memory_space<vmem>>, vector<8x32xbf16>
    %c0_2 = arith.constant 0 : index
    %c0_3 = arith.constant 0 : index
    %4 = vector.load %arg3[%c0_2, %c0_3] : memref<8x32xbf16, #tpu.memory_space<vmem>>, vector<8x32xbf16>
    %c0_4 = arith.constant 0 : index
    %c0_5 = arith.constant 0 : index
    %5 = vector.load %arg4[%c0_4, %c0_5] : memref<32x64xbf16, #tpu.memory_space<vmem>>, vector<32x64xbf16>
    %cst = arith.constant dense<0.000000e+00> : vector<8x64xf32>
    %6 = tpu.matmul %3, %5, %cst {dimension_numbers = #tpu.dot_dimension_numbers<[1], [0], [0], [1], [0, 0, 1, 1], [], []>} : vector<8x32xbf16>, vector<32x64xbf16>, vector<8x64xf32> -> vector<8x64xf32>
    %c0_6 = arith.constant 0 : index
    %c0_7 = arith.constant 0 : index
    %7 = vector.load %arg5[%c0_6, %c0_7] : memref<1x64xf32, #tpu.memory_space<vmem>>, vector<1x64xf32>
    %8 = vector.broadcast %7 : vector<1x64xf32> to vector<8x64xf32>
    %9 = arith.addf %6, %8 : vector<8x64xf32>
    %c0_8 = arith.constant 0 : index
    %c0_9 = arith.constant 0 : index
    %10 = vector.load %arg6[%c0_8, %c0_9] : memref<32x64xbf16, #tpu.memory_space<vmem>>, vector<32x64xbf16>
    %cst_10 = arith.constant dense<0.000000e+00> : vector<8x64xf32>
    %11 = tpu.matmul %4, %10, %cst_10 {dimension_numbers = #tpu.dot_dimension_numbers<[1], [0], [0], [1], [0, 0, 1, 1], [], []>} : vector<8x32xbf16>, vector<32x64xbf16>, vector<8x64xf32> -> vector<8x64xf32>
    %c0_11 = arith.constant 0 : index
    %c0_12 = arith.constant 0 : index
    %12 = vector.load %arg7[%c0_11, %c0_12] : memref<1x64xf32, #tpu.memory_space<vmem>>, vector<1x64xf32>
    %13 = vector.broadcast %12 : vector<1x64xf32> to vector<8x64xf32>
    %14 = arith.addf %11, %13 : vector<8x64xf32>
    %15 = arith.mulf %9, %14 : vector<8x64xf32>
    %16 = arith.truncf %15 : vector<8x64xf32> to vector<8x64xbf16>
    %c0_13 = arith.constant 0 : index
    %c0_14 = arith.constant 0 : index
    %17 = vector.load %arg11[%c0_13, %c0_14] : memref<8x32xf32, #tpu.memory_space<vmem>>, vector<8x32xf32>
    %c0_15 = arith.constant 0 : index
    %c0_16 = arith.constant 0 : index
    %18 = vector.load %arg8[%c0_15, %c0_16] : memref<64x32xbf16, #tpu.memory_space<vmem>>, vector<64x32xbf16>
    %cst_17 = arith.constant dense<0.000000e+00> : vector<8x32xf32>
    %19 = tpu.matmul %16, %18, %cst_17 {dimension_numbers = #tpu.dot_dimension_numbers<[1], [0], [0], [1], [0, 0, 1, 1], [], []>} : vector<8x64xbf16>, vector<64x32xbf16>, vector<8x32xf32> -> vector<8x32xf32>
    %20 = arith.addf %17, %19 : vector<8x32xf32>
    %c0_18 = arith.constant 0 : index
    %c0_19 = arith.constant 0 : index
    %21 = vector.load %arg11[%c0_18, %c0_19] : memref<8x32xf32, #tpu.memory_space<vmem>>, vector<8x32xf32>
    tpu.vector_store %arg11[%c0_18, %c0_19], %20 {strides = array<i32>} : memref<8x32xf32, #tpu.memory_space<vmem>>, vector<8x32xf32>,
    %c0_i32_20 = arith.constant 0 : i32
    %22 = arith.cmpi eq, %arg1, %c0_i32_20 : i32
    %23 = arith.extui %22 : i1 to i32
    %c0_i32_21 = arith.constant 0 : i32
    %24 = arith.cmpi ne, %23, %c0_i32_21 : i32
    scf.if %24 {
      %c0_22 = arith.constant 0 : index
      %c0_23 = arith.constant 0 : index
      %25 = vector.load %arg11[%c0_22, %c0_23] : memref<8x32xf32, #tpu.memory_space<vmem>>, vector<8x32xf32>
      %c0_24 = arith.constant 0 : index
      %c0_25 = arith.constant 0 : index
      %26 = vector.load %arg9[%c0_24, %c0_25] : memref<1x32xf32, #tpu.memory_space<vmem>>, vector<1x32xf32>
      %27 = vector.broadcast %26 : vector<1x32xf32> to vector<8x32xf32>
      %28 = arith.addf %25, %27 : vector<8x32xf32>
      %c0_26 = arith.constant 0 : index
      %c0_27 = arith.constant 0 : index
      %29 = vector.load %arg10[%c0_26, %c0_27] : memref<8x32xf32, #tpu.memory_space<vmem>>, vector<8x32xf32>
      tpu.vector_store %arg10[%c0_26, %c0_27], %28 {strides = array<i32>} : memref<8x32xf32, #tpu.memory_space<vmem>>, vector<8x32xf32>,
    } else {
    }
    return
  }
  func.func @transform_0(%arg0: i32, %arg1: i32) -> (i32, i32) {
    %c0_i32 = arith.constant 0 : i32
    %c0_i32_0 = arith.constant 0 : i32
    return %arg0, %c0_i32 : i32, i32
  }
  func.func @transform_1(%arg0: i32, %arg1: i32) -> (i32, i32) {
    %c0_i32 = arith.constant 0 : i32
    %c0_i32_0 = arith.constant 0 : i32
    return %arg0, %c0_i32 : i32, i32
  }
  func.func @transform_2(%arg0: i32, %arg1: i32) -> (i32, i32) {
    %c0_i32 = arith.constant 0 : i32
    %c0_i32_0 = arith.constant 0 : i32
    return %c0_i32, %arg1 : i32, i32
  }
  func.func @transform_3(%arg0: i32, %arg1: i32) -> (i32, i32) {
    %c0_i32 = arith.constant 0 : i32
    %c0_i32_0 = arith.constant 0 : i32
    return %c0_i32, %arg1 : i32, i32
  }
  func.func @transform_4(%arg0: i32, %arg1: i32) -> (i32, i32) {
    %c0_i32 = arith.constant 0 : i32
    %c0_i32_0 = arith.constant 0 : i32
    return %c0_i32, %arg1 : i32, i32
  }
  func.func @transform_5(%arg0: i32, %arg1: i32) -> (i32, i32) {
    %c0_i32 = arith.constant 0 : i32
    %c0_i32_0 = arith.constant 0 : i32
    return %c0_i32, %arg1 : i32, i32
  }
  func.func @transform_6(%arg0: i32, %arg1: i32) -> (i32, i32) {
    %c0_i32 = arith.constant 0 : i32
    %c0_i32_0 = arith.constant 0 : i32
    return %arg1, %c0_i32 : i32, i32
  }
  func.func @transform_7(%arg0: i32, %arg1: i32) -> (i32, i32) {
    %c0_i32 = arith.constant 0 : i32
    %c0_i32_0 = arith.constant 0 : i32
    %c0_i32_1 = arith.constant 0 : i32
    return %c0_i32, %c0_i32_0 : i32, i32
  }
  func.func @transform_8(%arg0: i32, %arg1: i32) -> (i32, i32) {
    %c0_i32 = arith.constant 0 : i32
    %c0_i32_0 = arith.constant 0 : i32
    return %arg0, %c0_i32 : i32, i32
  }
}

</mosaic_0001>

<bundles_post_ra>
// kernel: tpu_custom_call.1
= control target key start
LH: loop header
LB: loop body
LE: loop exit
PB: predicated region body
PF: predicated region fallthrough
CT: control target
= control target key end

     0   :  { %s360_s0 = inlined_call_operand.vmem [shape: bf16[8,32], index: 0, kind: input, shape index: {}]   ;;  %s361_s1 = inlined_call_operand.vmem [shape: bf16[8,32], index: 1, kind: input, shape index: {}]   ;;  %s362_s2 = inlined_call_operand.vmem [shape: bf16[32,64], index: 2, kind: input, shape index: {}]   ;;  %s363_s3 = inlined_call_operand.vmem [shape: f32[1,64], index: 3, kind: input, shape index: {}]   ;;  %s364_s4 = inlined_call_operand.vmem [shape: bf16[32,64], index: 4, kind: input, shape index: {}]   ;;  %s365_s5 = inlined_call_operand.vmem [shape: f32[1,64], index: 5, kind: input, shape index: {}]   ;;  %s366_s6 = inlined_call_operand.vmem [shape: bf16[64,32], index: 6, kind: input, shape index: {}]   ;;  %s367_s7 = inlined_call_operand.vmem [shape: f32[1,32], index: 7, kind: input, shape index: {}]   ;;  %s368_s8 = inlined_call_operand.hbm [shape: f32[8,32], index: 8, kind: output, shape index: {}]  }
   0x1   :  { %v228_v0 = vld [vmem:[%s362_s2 + $0x8] sm:$0xff]  ;;  %v227_v2 = vld [vmem:[%s362_s2] sm:$0xff]  ;;  %v234_v4 = vld [vmem:[%s366_s6 + $0x18] sm:$0xff] }
   0x2   :  { %v230_v1 = vld [vmem:[%s364_s4 + $0x8] sm:$0xff]  ;;  %69 = vmatpush.bf16.msra.mxu0 %v228_v0  ;;  %v229_v3 = vld [vmem:[%s364_s4] sm:$0xff] }
   0x3   :  { %105 = vmatpush.bf16.msra.mxu1 %v230_v1 }
   0x4   :  { %13 = vsyncpa [#allocation4], 0  ;;  %155 = vmatpush.bf16.msra.mxu2 %v234_v4  ;;  %v233_v5 = vld [vmem:[%s366_s6 + $0x10] sm:$0xff]  ;;  %vm35_vm0 = vcmask 261120   ;;  %v37_v6 = vld [vmem:[%s360_s0] sm:$0xf] }
   0x5   :  { %v38_v7 = vld [vmem:[%s361_s1] sm:$0xf]  ;;  %v232_v8 = vld [vmem:[%s366_s6 + $0x8] sm:$0xff]  ;;  %v266_v10 = vmov 0.0   ;;  %vm147_vm1 = vcmask 523264   ;;  %s183_s28 = sshll.u32 %s368_s8, 4  ;;  %s184_s28 = int_to_ptr.hbm [resolvable:$true] %s183_s28 }
   0x6   :  { %70 = vmatpush.bf16.msra.mxu0 %v227_v2  ;;  %v231_v9 = vld [vmem:[%s366_s6] sm:$0xff]  ;;  %36 = vst.msk [vmem:[#allocation2] sm:$0xff] %vm35_vm0, %v266_v10 }
   0x7   :  { %106 = vmatpush.bf16.msra.mxu1 %v229_v3  ;;  %v237_v11 = vld [vmem:[%s363_s3] ss:$0 sm:$0xff] }
   0x8   :  { %156 = vmatpush.bf16.msra.mxu2 %v233_v5  ;;  %v238_v12 = vld [vmem:[%s365_s5] ss:$0 sm:$0xff]  ;;  %s267_s5 = smov [#allocation3]  }
   0x9   :  { %200 = vmatmul.msk.bf16.vlgmr.msra.gmra.mxu0 %vm35_vm0, %v37_v6  ;;  %v239_v24 = vld [vmem:[%s367_s7] ss:$0 sm:$0xff]  ;;  %s181_s25 = sshll.u32 %s267_s5, 4  ;;  %s182_s25 = int_to_ptr.vmem [resolvable:$true] %s181_s25 }
   0xa   :  { %209 = vmatmul.msk.bf16.vlgmr.msra.gmra.mxu1 %vm35_vm0, %v38_v7 }
   0xc   :  { %157 = vmatpush.bf16.msra.mxu2 %v232_v8 }
   0xd   :  { %v114_v21 = vld [vmem:[#allocation2] sm:$0xff] }
  0x10   :  { %158 = vmatpush.bf16.msra.mxu2 %v231_v9 }
  0x86   :  { %v72_v13 = vpop.f32.mrf.mxu0 }
  0x87   :  { %v108_v14 = vpop.f32.mrf.mxu1  ;;  %v73_v15 = vadd.f32 %v237_v11, %v72_v13 }
  0x88   :  { %v109_v16 = vadd.f32 %v238_v12, %v108_v14 }
  0x8a   :  { %v112_v17 = vmul.f32 %v109_v16, %v73_v15 }
  0x8c   :  { %v113_v18 = vpack.c.bf16 %v112_v17, %v112_v17 }
  0x8e   :  { %226 = vmatmul.msk.bf16.vlgmr.msra.gmra.mxu2 %vm147_vm1, %v113_v18  ;;  %v74_v19 = vpop.f32.mrf.mxu0 }
  0x8f   :  { %v110_v20 = vpop.f32.mrf.mxu1 }
 0x111   :  { %v160_v22 = vpop.f32.mrf.mxu2 }
 0x112   :  { %v164_v23 = vadd.f32 %v160_v22, %v114_v21 }
 0x114   :  { %165 = vst.msk [vmem:[#allocation2] sm:$0xff] %vm35_vm0, %v164_v23 }
 0x119   :  { %v162_v25 = vpop.f32.mrf.mxu2 }
 0x11b   :  { %v169_v26 = vld [vmem:[#allocation2] sm:$0xff] }
 0x11c   :  { %v174_v27 = vadd.f32 %v239_v24, %v169_v26 }
 0x11e   :  { %175 = vst.msk [vmem:[#allocation3] sm:$0xff] %vm35_vm0, %v174_v27 }
 0x11f   :  { %186 = dma.vmem_to_hbm [thread:$0]  %s182_s25, 128, %s184_s28, [#allocation4]  }
 0x120   :  { %264 = dma.done.wait [#allocation4], 128  }
 0x121   :  { %265 = vsyncadd [#allocation4], 4294967168 }
 0x122   :  { %191 = vsyncpa [#allocation4], 1 }

</bundles_post_ra>
